<compile_context>
chip_gen: v7x
topology: tpu7x:2x2x1
jax: 0.10.0
libtpu: 0.0.40
codegen_flags: <defaults>
</compile_context>

<pallas_src>
import functools

import jax
import jax.numpy as jnp
from jax.experimental import pallas as pl
from jax.experimental.pallas import tpu as pltpu


def _round_up(x, m):
    return ((x + m - 1) // m) * m


# --------------------------------------------------------------------------------------
# Kernel
# --------------------------------------------------------------------------------------
def _fused_bag_kernel(idx_ref, w_ref, cnt_ref, out_ref, acc_ref):
    """Grid = (batch_blocks, vocab_tiles); vocab is the (innermost) reduction axis.

    idx_ref: (bt, FL)   int32  packed, offset indices; padding positions == -1
    w_ref:   (Vt, FDp)  f32    one vocab tile of the block-diagonal packed table
    cnt_ref: (FL, FDp)  f32    indicator: bag position p -> columns of its feature
    out_ref: (bt, FDp)  f32
    acc_ref: (bt, FDp)  f32    accumulator scratch (persists across vocab tiles)
    """
    v = pl.program_id(1)

    @pl.when(v == 0)
    def _():
        acc_ref[...] = jnp.zeros_like(acc_ref)

    idx = idx_ref[...]                                   # (bt, FL) int32
    bt, fl = idx.shape
    vt = w_ref.shape[0]

    # Row ids covered by this vocab tile.
    row_ids = v * vt + jax.lax.broadcasted_iota(jnp.int32, (bt, vt), 1)

    # Per-position accumulation of the one-hot count matrix M (no 3-D intermediate,
    # no XLU reduce). Padding positions are -1 and never match any row id.
    m = jnp.zeros((bt, vt), jnp.float32)
    for p in range(fl):                                  # static unroll; FL is small
        m = m + (idx[:, p:p + 1] == row_ids).astype(jnp.float32)

    acc_ref[...] += jnp.dot(m, w_ref[...], preferred_element_type=jnp.float32)

    @pl.when(v == pl.num_programs(1) - 1)
    def _():
        # Non-padding counts per output column, from the indices (cost ~ FL, not ~ V).
        valid = (idx >= 0).astype(jnp.float32)           # (bt, FL)
        cnt = jnp.dot(valid, cnt_ref[...], preferred_element_type=jnp.float32)  # (bt, FDp)
        out_ref[...] = acc_ref[...] / jnp.maximum(cnt, 1.0)


@functools.partial(jax.jit, static_argnames=("block_b", "vocab_tile"))
def _fused_embedding_bag(idx_all, w_bd, cntmap, *, block_b, vocab_tile):
    """idx_all: (B, FL) int32; w_bd: (R_pad, FD_pad) f32; cntmap: (FL, FD_pad) f32."""
    B, FL = idx_all.shape
    R_pad, FD_pad = w_bd.shape
    vt = vocab_tile
    assert R_pad % vt == 0 and FD_pad % 128 == 0

    # Large batch tile (fill the MXU M dim, amortize per-grid-step overhead); keep the
    # (8, 128) tiling rule: bt is either the full batch or a multiple of 8.
    bb = max(8, _round_up(block_b, 8))
    bt = B if B <= bb else bb
    nb = pl.cdiv(B, bt)
    nv = R_pad // vt

    # Explicit VMEM budget (double-buffered inputs/outputs + accumulator) with headroom,
    # clamped so we stay inside v7x's 64 MiB / v5e's scoped limits.
    need = 2 * (bt * FL * 4 + vt * FD_pad * 4 + FL * FD_pad * 4 + bt * FD_pad * 4) \
        + bt * FD_pad * 4
    vmem_limit = int(min(max(2 * need, 16 << 20), 48 << 20))

    return pl.pallas_call(
        _fused_bag_kernel,
        out_shape=jax.ShapeDtypeStruct((B, FD_pad), jnp.float32),
        grid_spec=pltpu.PrefetchScalarGridSpec(
            num_scalar_prefetch=0,
            grid=(nb, nv),                               # vocab (reduction) axis last
            in_specs=[
                pl.BlockSpec((bt, FL), lambda i, v: (i, 0)),        # packed index bags
                pl.BlockSpec((vt, FD_pad), lambda i, v: (v, 0)),    # vocab tile of packed table
                pl.BlockSpec((FL, FD_pad), lambda i, v: (0, 0)),    # position->feature columns
            ],
            out_specs=pl.BlockSpec((bt, FD_pad), lambda i, v: (i, 0)),
            scratch_shapes=[pltpu.VMEM((bt, FD_pad), jnp.float32)],
        ),
        compiler_params=pltpu.CompilerParams(
            dimension_semantics=("parallel", "arbitrary"),
            vmem_limit_bytes=vmem_limit,
        ),
    )(idx_all, w_bd, cntmap)


# --------------------------------------------------------------------------------------
# Host-side packing ("module init") and forward wrapper
# --------------------------------------------------------------------------------------
def fuse_embedding_params(weights, bag_lens, vocab_tile=512, lane_pad=128):
    """Pack per-feature EmbeddingBag tables into one block-diagonal table + column maps.

    weights:  list of (V_f + 1, D_f) float32 tables (row 0 = padding row)
    bag_lens: list of per-feature bag lengths L_f
    """
    dims = [int(w.shape[1]) for w in weights]
    rows = [int(w.shape[0]) for w in weights]
    n_feat = len(weights)
    fd = sum(dims)
    fd_pad = _round_up(fd, lane_pad)                     # lane-dense, >=128-wide output
    r = sum(rows)

    vt = _round_up(min(vocab_tile, _round_up(r, 8)), 8)
    # Keep a double-buffered weight tile under ~8 MiB of VMEM.
    while vt > 8 and 2 * vt * fd_pad * 4 > (8 << 20):
        vt = max(8, _round_up(vt // 2, 8))
    r_pad = _round_up(r, vt)

    row_off, col_off, pos_off = [0], [0], [0]
    for f in range(n_feat - 1):
        row_off.append(row_off[-1] + rows[f])
        col_off.append(col_off[-1] + dims[f])
        pos_off.append(pos_off[-1] + int(bag_lens[f]))
    fl = sum(int(l) for l in bag_lens)

    w_bd = jnp.zeros((r_pad, fd_pad), jnp.float32)
    cntmap = jnp.zeros((fl, fd_pad), jnp.float32)
    for f, w in enumerate(weights):
        w_bd = w_bd.at[row_off[f]:row_off[f] + rows[f],
                       col_off[f]:col_off[f] + dims[f]].set(w.astype(jnp.float32))
        cntmap = cntmap.at[pos_off[f]:pos_off[f] + int(bag_lens[f]),
                           col_off[f]:col_off[f] + dims[f]].set(1.0)

    return {
        "w_bd": w_bd,
        "cntmap": cntmap,
        "row_offsets": row_off,
        "dims": dims,
        "bag_lens": [int(l) for l in bag_lens],
        "vocab_tile": int(vt),
        "out_dim": int(fd),
    }


def _pack_indices(xs, row_offsets):
    """Offset each feature's indices into the packed row space; padding (0) -> -1."""
    cols = []
    for x, off in zip(xs, row_offsets):
        x = x.astype(jnp.int32)
        cols.append(jnp.where(x == 0, jnp.int32(-1), x + jnp.int32(off)))
    return jnp.concatenate(cols, axis=1)                 # (B, FL)


def multi_hot_embedding_forward(xs, fused, cat_emb=False, block_b=256):
    """Forward pass of MultiHotEmbeddingLayer (mean mode, padding_idx=0)."""
    idx_all = _pack_indices(xs, fused["row_offsets"])
    out_wide = _fused_embedding_bag(
        idx_all, fused["w_bd"], fused["cntmap"],
        block_b=block_b, vocab_tile=fused["vocab_tile"])
    out = out_wide[:, :fused["out_dim"]]                 # drop lane padding
    if cat_emb:
        return out                                       # (B, sum D_f)
    dims = fused["dims"]
    assert all(d == dims[0] for d in dims), "stack output requires equal embedding dims"
    return out.reshape(out.shape[0], len(dims), dims[0])  # (B, F, D)


# --------------------------------------------------------------------------------------
# Pure-JAX reference (torch.nn.EmbeddingBag mean + padding_idx=0)
# --------------------------------------------------------------------------------------
def _reference_embedding_bag_mean(idx, weight):
    mask = (idx != 0).astype(jnp.float32)                # (B, L)
    gathered = weight[idx] * mask[:, :, None]            # (B, L, D)
    s = gathered.sum(axis=1)
    cnt = jnp.maximum(mask.sum(axis=1, keepdims=True), 1.0)
    return s / cnt


if __name__ == "__main__":
    key = jax.random.PRNGKey(0)

    # Module config: 3 multi-hot features (small, consistent with the PyTorch __init__).
    num_embeddings_list = [10, 20, 15]
    embedding_dim_list = [32, 32, 32]                    # equal dims so stack(dim=1) is valid
    batch = 2
    bag_len = 8

    # Deterministic parameters: N(0,1) like nn.EmbeddingBag, padding row zeroed.
    weights = []
    for n_emb, d in zip(num_embeddings_list, embedding_dim_list):
        key, wk = jax.random.split(key)
        w = jax.random.normal(wk, (n_emb + 1, d), dtype=jnp.float32)
        w = w.at[0].set(0.0)
        weights.append(w)

    # Deterministic inputs: indices in [0, n_emb]; 0 acts as padding.
    xs = []
    for n_emb in num_embeddings_list:
        key, ik = jax.random.split(key)
        xs.append(jax.random.randint(ik, (batch, bag_len), 0, n_emb + 1, dtype=jnp.int32))

    fused = fuse_embedding_params(weights, [x.shape[1] for x in xs])

    # stack output path (cat_emb=False)
    out = multi_hot_embedding_forward(xs, fused, cat_emb=False)
    out = jax.block_until_ready(out)
    assert out.shape == (batch, len(num_embeddings_list), embedding_dim_list[0])
    ref = jnp.stack([_reference_embedding_bag_mean(x, w) for x, w in zip(xs, weights)], axis=1)
    assert jnp.allclose(out, ref, atol=1e-5, rtol=1e-5), float(jnp.max(jnp.abs(out - ref)))

    # concat output path (cat_emb=True)
    out_cat = jax.block_until_ready(multi_hot_embedding_forward(xs, fused, cat_emb=True))
    ref_cat = jnp.concatenate(
        [_reference_embedding_bag_mean(x, w) for x, w in zip(xs, weights)], axis=1)
    assert jnp.allclose(out_cat, ref_cat, atol=1e-5, rtol=1e-5)

    print("KERNEL_OK")
</pallas_src>

<mosaic_0001>
module attributes {stable_mosaic.version = 11 : i64} {
  func.func @_fused_bag_kernel(%arg0: i32, %arg1: i32, %arg2: memref<2x24xi32, #tpu.memory_space<vmem>>, %arg3: memref<48x128xf32, #tpu.memory_space<vmem>>, %arg4: memref<24x128xf32, #tpu.memory_space<vmem>>, %arg5: memref<2x128xf32, #tpu.memory_space<vmem>>, %arg6: memref<2x128xf32, #tpu.memory_space<vmem>>) attributes {dimension_semantics = [#tpu.dimension_semantics<parallel>, #tpu.dimension_semantics<arbitrary>], iteration_bounds = array<i64: 1, 1>, scalar_prefetch = 0 : i64, scratch_operands = 1 : i64, tpu.core_type = #tpu.core_type<tc>, window_params = [{transform_indices = @transform_0, window_bounds = array<i64: 2, 24>}, {transform_indices = @transform_1, window_bounds = array<i64: 48, 128>}, {pipeline_mode = #tpu.pipeline_mode<synchronous>, transform_indices = @transform_2, window_bounds = array<i64: 24, 128>}, {transform_indices = @transform_3, window_bounds = array<i64: 2, 128>}]} {
    %c0_i32 = arith.constant 0 : i32
    %0 = arith.cmpi eq, %arg1, %c0_i32 : i32
    %1 = arith.extui %0 : i1 to i32
    %c0_i32_0 = arith.constant 0 : i32
    %2 = arith.cmpi ne, %1, %c0_i32_0 : i32
    scf.if %2 {
      %cst_11 = arith.constant 0.000000e+00 : f32
      %161 = vector.broadcast %cst_11 : f32 to vector<2x128xf32>
      %c0_12 = arith.constant 0 : index
      %c0_13 = arith.constant 0 : index
      %162 = vector.load %arg6[%c0_12, %c0_13] : memref<2x128xf32, #tpu.memory_space<vmem>>, vector<2x128xf32>
      tpu.vector_store %arg6[%c0_12, %c0_13], %161 {strides = array<i32>} : memref<2x128xf32, #tpu.memory_space<vmem>>, vector<2x128xf32>,
    } else {
    }
    %c0 = arith.constant 0 : index
    %c0_1 = arith.constant 0 : index
    %3 = vector.load %arg2[%c0, %c0_1] : memref<2x24xi32, #tpu.memory_space<vmem>>, vector<2x24xi32>
    %c48_i32 = arith.constant 48 : i32
    %4 = arith.muli %arg1, %c48_i32 : i32
    %5 = tpu.iota {dimensions = array<i32: 1>} : vector<2x48xi32>
    %6 = vector.broadcast %4 : i32 to vector<2x48xi32>
    %7 = arith.addi %6, %5 : vector<2x48xi32>
    %cst = arith.constant 0.000000e+00 : f32
    %8 = vector.broadcast %cst : f32 to vector<2x48xf32>
    %9 = vector.extract_strided_slice %3 {offsets = [0, 0], sizes = [2, 1], strides = [1, 1]} : vector<2x24xi32> to vector<2x1xi32>
    %10 = vector.broadcast %9 : vector<2x1xi32> to vector<2x48xi32>
    %11 = arith.cmpi eq, %10, %7 : vector<2x48xi32>
    %12 = arith.extui %11 : vector<2x48xi1> to vector<2x48xi32>
    %13 = arith.sitofp %12 : vector<2x48xi32> to vector<2x48xf32>
    %14 = arith.addf %8, %13 : vector<2x48xf32>
    %15 = vector.extract_strided_slice %3 {offsets = [0, 1], sizes = [2, 1], strides = [1, 1]} : vector<2x24xi32> to vector<2x1xi32>
    %16 = vector.broadcast %15 : vector<2x1xi32> to vector<2x48xi32>
    %17 = arith.cmpi eq, %16, %7 : vector<2x48xi32>
    %18 = arith.extui %17 : vector<2x48xi1> to vector<2x48xi32>
    %19 = arith.sitofp %18 : vector<2x48xi32> to vector<2x48xf32>
    %20 = arith.addf %14, %19 : vector<2x48xf32>
    %21 = vector.extract_strided_slice %3 {offsets = [0, 2], sizes = [2, 1], strides = [1, 1]} : vector<2x24xi32> to vector<2x1xi32>
    %22 = vector.broadcast %21 : vector<2x1xi32> to vector<2x48xi32>
    %23 = arith.cmpi eq, %22, %7 : vector<2x48xi32>
    %24 = arith.extui %23 : vector<2x48xi1> to vector<2x48xi32>
    %25 = arith.sitofp %24 : vector<2x48xi32> to vector<2x48xf32>
    %26 = arith.addf %20, %25 : vector<2x48xf32>
    %27 = vector.extract_strided_slice %3 {offsets = [0, 3], sizes = [2, 1], strides = [1, 1]} : vector<2x24xi32> to vector<2x1xi32>
    %28 = vector.broadcast %27 : vector<2x1xi32> to vector<2x48xi32>
    %29 = arith.cmpi eq, %28, %7 : vector<2x48xi32>
    %30 = arith.extui %29 : vector<2x48xi1> to vector<2x48xi32>
    %31 = arith.sitofp %30 : vector<2x48xi32> to vector<2x48xf32>
    %32 = arith.addf %26, %31 : vector<2x48xf32>
    %33 = vector.extract_strided_slice %3 {offsets = [0, 4], sizes = [2, 1], strides = [1, 1]} : vector<2x24xi32> to vector<2x1xi32>
    %34 = vector.broadcast %33 : vector<2x1xi32> to vector<2x48xi32>
    %35 = arith.cmpi eq, %34, %7 : vector<2x48xi32>
    %36 = arith.extui %35 : vector<2x48xi1> to vector<2x48xi32>
    %37 = arith.sitofp %36 : vector<2x48xi32> to vector<2x48xf32>
    %38 = arith.addf %32, %37 : vector<2x48xf32>
    %39 = vector.extract_strided_slice %3 {offsets = [0, 5], sizes = [2, 1], strides = [1, 1]} : vector<2x24xi32> to vector<2x1xi32>
    %40 = vector.broadcast %39 : vector<2x1xi32> to vector<2x48xi32>
    %41 = arith.cmpi eq, %40, %7 : vector<2x48xi32>
    %42 = arith.extui %41 : vector<2x48xi1> to vector<2x48xi32>
    %43 = arith.sitofp %42 : vector<2x48xi32> to vector<2x48xf32>
    %44 = arith.addf %38, %43 : vector<2x48xf32>
    %45 = vector.extract_strided_slice %3 {offsets = [0, 6], sizes = [2, 1], strides = [1, 1]} : vector<2x24xi32> to vector<2x1xi32>
    %46 = vector.broadcast %45 : vector<2x1xi32> to vector<2x48xi32>
    %47 = arith.cmpi eq, %46, %7 : vector<2x48xi32>
    %48 = arith.extui %47 : vector<2x48xi1> to vector<2x48xi32>
    %49 = arith.sitofp %48 : vector<2x48xi32> to vector<2x48xf32>
    %50 = arith.addf %44, %49 : vector<2x48xf32>
    %51 = vector.extract_strided_slice %3 {offsets = [0, 7], sizes = [2, 1], strides = [1, 1]} : vector<2x24xi32> to vector<2x1xi32>
    %52 = vector.broadcast %51 : vector<2x1xi32> to vector<2x48xi32>
    %53 = arith.cmpi eq, %52, %7 : vector<2x48xi32>
    %54 = arith.extui %53 : vector<2x48xi1> to vector<2x48xi32>
    %55 = arith.sitofp %54 : vector<2x48xi32> to vector<2x48xf32>
    %56 = arith.addf %50, %55 : vector<2x48xf32>
    %57 = vector.extract_strided_slice %3 {offsets = [0, 8], sizes = [2, 1], strides = [1, 1]} : vector<2x24xi32> to vector<2x1xi32>
    %58 = vector.broadcast %57 : vector<2x1xi32> to vector<2x48xi32>
    %59 = arith.cmpi eq, %58, %7 : vector<2x48xi32>
    %60 = arith.extui %59 : vector<2x48xi1> to vector<2x48xi32>
    %61 = arith.sitofp %60 : vector<2x48xi32> to vector<2x48xf32>
    %62 = arith.addf %56, %61 : vector<2x48xf32>
    %63 = vector.extract_strided_slice %3 {offsets = [0, 9], sizes = [2, 1], strides = [1, 1]} : vector<2x24xi32> to vector<2x1xi32>
    %64 = vector.broadcast %63 : vector<2x1xi32> to vector<2x48xi32>
    %65 = arith.cmpi eq, %64, %7 : vector<2x48xi32>
    %66 = arith.extui %65 : vector<2x48xi1> to vector<2x48xi32>
    %67 = arith.sitofp %66 : vector<2x48xi32> to vector<2x48xf32>
    %68 = arith.addf %62, %67 : vector<2x48xf32>
    %69 = vector.extract_strided_slice %3 {offsets = [0, 10], sizes = [2, 1], strides = [1, 1]} : vector<2x24xi32> to vector<2x1xi32>
    %70 = vector.broadcast %69 : vector<2x1xi32> to vector<2x48xi32>
    %71 = arith.cmpi eq, %70, %7 : vector<2x48xi32>
    %72 = arith.extui %71 : vector<2x48xi1> to vector<2x48xi32>
    %73 = arith.sitofp %72 : vector<2x48xi32> to vector<2x48xf32>
    %74 = arith.addf %68, %73 : vector<2x48xf32>
    %75 = vector.extract_strided_slice %3 {offsets = [0, 11], sizes = [2, 1], strides = [1, 1]} : vector<2x24xi32> to vector<2x1xi32>
    %76 = vector.broadcast %75 : vector<2x1xi32> to vector<2x48xi32>
    %77 = arith.cmpi eq, %76, %7 : vector<2x48xi32>
    %78 = arith.extui %77 : vector<2x48xi1> to vector<2x48xi32>
    %79 = arith.sitofp %78 : vector<2x48xi32> to vector<2x48xf32>
    %80 = arith.addf %74, %79 : vector<2x48xf32>
    %81 = vector.extract_strided_slice %3 {offsets = [0, 12], sizes = [2, 1], strides = [1, 1]} : vector<2x24xi32> to vector<2x1xi32>
    %82 = vector.broadcast %81 : vector<2x1xi32> to vector<2x48xi32>
    %83 = arith.cmpi eq, %82, %7 : vector<2x48xi32>
    %84 = arith.extui %83 : vector<2x48xi1> to vector<2x48xi32>
    %85 = arith.sitofp %84 : vector<2x48xi32> to vector<2x48xf32>
    %86 = arith.addf %80, %85 : vector<2x48xf32>
    %87 = vector.extract_strided_slice %3 {offsets = [0, 13], sizes = [2, 1], strides = [1, 1]} : vector<2x24xi32> to vector<2x1xi32>
    %88 = vector.broadcast %87 : vector<2x1xi32> to vector<2x48xi32>
    %89 = arith.cmpi eq, %88, %7 : vector<2x48xi32>
    %90 = arith.extui %89 : vector<2x48xi1> to vector<2x48xi32>
    %91 = arith.sitofp %90 : vector<2x48xi32> to vector<2x48xf32>
    %92 = arith.addf %86, %91 : vector<2x48xf32>
    %93 = vector.extract_strided_slice %3 {offsets = [0, 14], sizes = [2, 1], strides = [1, 1]} : vector<2x24xi32> to vector<2x1xi32>
    %94 = vector.broadcast %93 : vector<2x1xi32> to vector<2x48xi32>
    %95 = arith.cmpi eq, %94, %7 : vector<2x48xi32>
    %96 = arith.extui %95 : vector<2x48xi1> to vector<2x48xi32>
    %97 = arith.sitofp %96 : vector<2x48xi32> to vector<2x48xf32>
    %98 = arith.addf %92, %97 : vector<2x48xf32>
    %99 = vector.extract_strided_slice %3 {offsets = [0, 15], sizes = [2, 1], strides = [1, 1]} : vector<2x24xi32> to vector<2x1xi32>
    %100 = vector.broadcast %99 : vector<2x1xi32> to vector<2x48xi32>
    %101 = arith.cmpi eq, %100, %7 : vector<2x48xi32>
    %102 = arith.extui %101 : vector<2x48xi1> to vector<2x48xi32>
    %103 = arith.sitofp %102 : vector<2x48xi32> to vector<2x48xf32>
    %104 = arith.addf %98, %103 : vector<2x48xf32>
    %105 = vector.extract_strided_slice %3 {offsets = [0, 16], sizes = [2, 1], strides = [1, 1]} : vector<2x24xi32> to vector<2x1xi32>
    %106 = vector.broadcast %105 : vector<2x1xi32> to vector<2x48xi32>
    %107 = arith.cmpi eq, %106, %7 : vector<2x48xi32>
    %108 = arith.extui %107 : vector<2x48xi1> to vector<2x48xi32>
    %109 = arith.sitofp %108 : vector<2x48xi32> to vector<2x48xf32>
    %110 = arith.addf %104, %109 : vector<2x48xf32>
    %111 = vector.extract_strided_slice %3 {offsets = [0, 17], sizes = [2, 1], strides = [1, 1]} : vector<2x24xi32> to vector<2x1xi32>
    %112 = vector.broadcast %111 : vector<2x1xi32> to vector<2x48xi32>
    %113 = arith.cmpi eq, %112, %7 : vector<2x48xi32>
    %114 = arith.extui %113 : vector<2x48xi1> to vector<2x48xi32>
    %115 = arith.sitofp %114 : vector<2x48xi32> to vector<2x48xf32>
    %116 = arith.addf %110, %115 : vector<2x48xf32>
    %117 = vector.extract_strided_slice %3 {offsets = [0, 18], sizes = [2, 1], strides = [1, 1]} : vector<2x24xi32> to vector<2x1xi32>
    %118 = vector.broadcast %117 : vector<2x1xi32> to vector<2x48xi32>
    %119 = arith.cmpi eq, %118, %7 : vector<2x48xi32>
    %120 = arith.extui %119 : vector<2x48xi1> to vector<2x48xi32>
    %121 = arith.sitofp %120 : vector<2x48xi32> to vector<2x48xf32>
    %122 = arith.addf %116, %121 : vector<2x48xf32>
    %123 = vector.extract_strided_slice %3 {offsets = [0, 19], sizes = [2, 1], strides = [1, 1]} : vector<2x24xi32> to vector<2x1xi32>
    %124 = vector.broadcast %123 : vector<2x1xi32> to vector<2x48xi32>
    %125 = arith.cmpi eq, %124, %7 : vector<2x48xi32>
    %126 = arith.extui %125 : vector<2x48xi1> to vector<2x48xi32>
    %127 = arith.sitofp %126 : vector<2x48xi32> to vector<2x48xf32>
    %128 = arith.addf %122, %127 : vector<2x48xf32>
    %129 = vector.extract_strided_slice %3 {offsets = [0, 20], sizes = [2, 1], strides = [1, 1]} : vector<2x24xi32> to vector<2x1xi32>
    %130 = vector.broadcast %129 : vector<2x1xi32> to vector<2x48xi32>
    %131 = arith.cmpi eq, %130, %7 : vector<2x48xi32>
    %132 = arith.extui %131 : vector<2x48xi1> to vector<2x48xi32>
    %133 = arith.sitofp %132 : vector<2x48xi32> to vector<2x48xf32>
    %134 = arith.addf %128, %133 : vector<2x48xf32>
    %135 = vector.extract_strided_slice %3 {offsets = [0, 21], sizes = [2, 1], strides = [1, 1]} : vector<2x24xi32> to vector<2x1xi32>
    %136 = vector.broadcast %135 : vector<2x1xi32> to vector<2x48xi32>
    %137 = arith.cmpi eq, %136, %7 : vector<2x48xi32>
    %138 = arith.extui %137 : vector<2x48xi1> to vector<2x48xi32>
    %139 = arith.sitofp %138 : vector<2x48xi32> to vector<2x48xf32>
    %140 = arith.addf %134, %139 : vector<2x48xf32>
    %141 = vector.extract_strided_slice %3 {offsets = [0, 22], sizes = [2, 1], strides = [1, 1]} : vector<2x24xi32> to vector<2x1xi32>
    %142 = vector.broadcast %141 : vector<2x1xi32> to vector<2x48xi32>
    %143 = arith.cmpi eq, %142, %7 : vector<2x48xi32>
    %144 = arith.extui %143 : vector<2x48xi1> to vector<2x48xi32>
    %145 = arith.sitofp %144 : vector<2x48xi32> to vector<2x48xf32>
    %146 = arith.addf %140, %145 : vector<2x48xf32>
    %147 = vector.extract_strided_slice %3 {offsets = [0, 23], sizes = [2, 1], strides = [1, 1]} : vector<2x24xi32> to vector<2x1xi32>
    %148 = vector.broadcast %147 : vector<2x1xi32> to vector<2x48xi32>
    %149 = arith.cmpi eq, %148, %7 : vector<2x48xi32>
    %150 = arith.extui %149 : vector<2x48xi1> to vector<2x48xi32>
    %151 = arith.sitofp %150 : vector<2x48xi32> to vector<2x48xf32>
    %152 = arith.addf %146, %151 : vector<2x48xf32>
    %c0_2 = arith.constant 0 : index
    %c0_3 = arith.constant 0 : index
    %153 = vector.load %arg6[%c0_2, %c0_3] : memref<2x128xf32, #tpu.memory_space<vmem>>, vector<2x128xf32>
    %c0_4 = arith.constant 0 : index
    %c0_5 = arith.constant 0 : index
    %154 = vector.load %arg3[%c0_4, %c0_5] : memref<48x128xf32, #tpu.memory_space<vmem>>, vector<48x128xf32>
    %cst_6 = arith.constant dense<0.000000e+00> : vector<2x128xf32>
    %155 = tpu.matmul %152, %154, %cst_6 {dimension_numbers = #tpu.dot_dimension_numbers<[1], [0], [0], [1], [0, 0, 1, 1], [], []>} : vector<2x48xf32>, vector<48x128xf32>, vector<2x128xf32> -> vector<2x128xf32>
    %156 = arith.addf %153, %155 : vector<2x128xf32>
    %c0_7 = arith.constant 0 : index
    %c0_8 = arith.constant 0 : index
    %157 = vector.load %arg6[%c0_7, %c0_8] : memref<2x128xf32, #tpu.memory_space<vmem>>, vector<2x128xf32>
    tpu.vector_store %arg6[%c0_7, %c0_8], %156 {strides = array<i32>} : memref<2x128xf32, #tpu.memory_space<vmem>>, vector<2x128xf32>,
    %c0_i32_9 = arith.constant 0 : i32
    %158 = arith.cmpi eq, %arg1, %c0_i32_9 : i32
    %159 = arith.extui %158 : i1 to i32
    %c0_i32_10 = arith.constant 0 : i32
    %160 = arith.cmpi ne, %159, %c0_i32_10 : i32
    scf.if %160 {
      %c0_i32_11 = arith.constant 0 : i32
      %161 = vector.broadcast %c0_i32_11 : i32 to vector<2x24xi32>
      %162 = arith.cmpi sge, %3, %161 : vector<2x24xi32>
      %163 = arith.extui %162 : vector<2x24xi1> to vector<2x24xi32>
      %164 = arith.sitofp %163 : vector<2x24xi32> to vector<2x24xf32>
      %c0_12 = arith.constant 0 : index
      %c0_13 = arith.constant 0 : index
      %165 = vector.load %arg4[%c0_12, %c0_13] : memref<24x128xf32, #tpu.memory_space<vmem>>, vector<24x128xf32>
      %cst_14 = arith.constant dense<0.000000e+00> : vector<2x128xf32>
      %166 = tpu.matmul %164, %165, %cst_14 {dimension_numbers = #tpu.dot_dimension_numbers<[1], [0], [0], [1], [0, 0, 1, 1], [], []>} : vector<2x24xf32>, vector<24x128xf32>, vector<2x128xf32> -> vector<2x128xf32>
      %c0_15 = arith.constant 0 : index
      %c0_16 = arith.constant 0 : index
      %167 = vector.load %arg6[%c0_15, %c0_16] : memref<2x128xf32, #tpu.memory_space<vmem>>, vector<2x128xf32>
      %cst_17 = arith.constant 1.000000e+00 : f32
      %168 = vector.broadcast %cst_17 : f32 to vector<2x128xf32>
      %169 = arith.maximumf %166, %168 : vector<2x128xf32>
      %170 = arith.divf %167, %169 : vector<2x128xf32>
      %c0_18 = arith.constant 0 : index
      %c0_19 = arith.constant 0 : index
      %171 = vector.load %arg5[%c0_18, %c0_19] : memref<2x128xf32, #tpu.memory_space<vmem>>, vector<2x128xf32>
      tpu.vector_store %arg5[%c0_18, %c0_19], %170 {strides = array<i32>} : memref<2x128xf32, #tpu.memory_space<vmem>>, vector<2x128xf32>,
    } else {
    }
    return
  }
  func.func @transform_0(%arg0: i32, %arg1: i32) -> (i32, i32) {
    %c0_i32 = arith.constant 0 : i32
    %c0_i32_0 = arith.constant 0 : i32
    return %arg0, %c0_i32 : i32, i32
  }
  func.func @transform_1(%arg0: i32, %arg1: i32) -> (i32, i32) {
    %c0_i32 = arith.constant 0 : i32
    %c0_i32_0 = arith.constant 0 : i32
    return %arg1, %c0_i32 : i32, i32
  }
  func.func @transform_2(%arg0: i32, %arg1: i32) -> (i32, i32) {
    %c0_i32 = arith.constant 0 : i32
    %c0_i32_0 = arith.constant 0 : i32
    %c0_i32_1 = arith.constant 0 : i32
    return %c0_i32, %c0_i32_0 : i32, i32
  }
  func.func @transform_3(%arg0: i32, %arg1: i32) -> (i32, i32) {
    %c0_i32 = arith.constant 0 : i32
    %c0_i32_0 = arith.constant 0 : i32
    return %arg0, %c0_i32 : i32, i32
  }
}

</mosaic_0001>

<bundles_post_ra>
// kernel: _fused_embedding_bag.1
= control target key start
LH: loop header
LB: loop body
LE: loop exit
PB: predicated region body
PF: predicated region fallthrough
CT: control target
= control target key end

     0   :  { %8 = vsyncpa [#allocation4], 0  ;;  %s836_s0 = inlined_call_operand.hbm [shape: s32[2,24], index: 0, kind: input, shape index: {}]   ;;  %s837_s1 = inlined_call_operand.hbm [shape: f32[48,128], index: 1, kind: input, shape index: {}]   ;;  %s838_s2 = inlined_call_operand.hbm [shape: f32[24,128], index: 2, kind: input, shape index: {}]   ;;  %s839_s3 = inlined_call_operand.hbm [shape: f32[2,128], index: 3, kind: output, shape index: {}]  }
   0x1   :  { %9 = vsyncpa [#allocation7], 0 }
   0x2   :  { %10 = vsyncpa [#allocation5], 0  ;;  %s647_s12 = smov [#allocation6]   ;;  %s553_s16 = scalar_lea.hbm %s837_s1, 768 }
   0x3   :  { %s26_s13 = sshll.u32 %s647_s12, 4  ;;  %p554_p0 = scmp.ne.s32.totalorder %s837_s1, %s553_s16  ;;  %s27_s13 = int_to_ptr.vmem [resolvable:$true] %s26_s13 }
   0x4   :  { %p557_p1 = scmp.lt.u32.totalorder %s553_s16, %s837_s1 }
   0x6   :  { %p559_p2 = pnand %p557_p1, %p554_p0 }
   0x8   :  { %562 = shalt.err (!%p559_p2)
}
   0x9   :  { %s563_s21 = scalar_lea.vmem %s27_s13, 768  ;;  %p568_p4 = scmp.lt.s32.totalorder %s27_s13, %s27_s13 }
   0xa   :  { %p564_p3 = scmp.ne.s32.totalorder %s27_s13, %s563_s21  ;;  %p569_p5 = scmp.lt.s32.totalorder %s563_s21, %s563_s21 }
   0xc   :  { %p570_p6 = por %p569_p5, %p568_p4 }
   0xe   :  { %p571_p7 = pnand %p570_p6, %p564_p3 }
  0x10   :  { %574 = shalt.err (!%p571_p7)
}
  0x11   :  { %s648_s22 = smov 128   ;;  %s649_s23 = smov 8  }
  0x12   :  { %32 = dma.hbm_to_vmem [thread:$0]  %s837_s1, 768, %s27_s13, [#allocation7], %s648_s22, %s648_s22, %s649_s23  }
  0x13   :  { %s650_s26 = smov [#allocation3]   ;;  %s651_s28 = smov [#allocation8]  }
  0x14   :  { %s17_s27 = sshll.u32 %s650_s26, 4  ;;  %s38_s29 = sshll.u32 %s651_s28, 4  ;;  %s18_s27 = int_to_ptr.vmem [resolvable:$true] %s17_s27  ;;  %s39_s29 = int_to_ptr.vmem [resolvable:$true] %s38_s29 }
  0x15   :  { %s575_s5 = scalar_lea.hbm %s836_s0, 32 }
  0x16   :  { %p576_p8 = scmp.ne.s32.totalorder %s836_s0, %s575_s5  ;;  %p579_p9 = scmp.lt.u32.totalorder %s575_s5, %s836_s0 }
  0x18   :  { %p581_p10 = pnand %p579_p9, %p576_p8 }
  0x1a   :  { %584 = shalt.err (!%p581_p10)
}
  0x1b   :  { %s585_s1 = scalar_lea.vmem %s18_s27, 32  ;;  %p590_p12 = scmp.lt.s32.totalorder %s18_s27, %s18_s27 }
  0x1c   :  { %p586_p11 = scmp.ne.s32.totalorder %s18_s27, %s585_s1  ;;  %p591_p13 = scmp.lt.s32.totalorder %s585_s1, %s585_s1 }
  0x1e   :  { %p592_p0 = por %p591_p13, %p590_p12 }
  0x20   :  { %p593_p1 = pnand %p592_p0, %p586_p11 }
  0x22   :  { %596 = shalt.err (!%p593_p1)
}
  0x23   :  { %20 = dma.hbm_to_vmem [thread:$0]  %s836_s0, 32, %s18_s27, [#allocation4]  }
  0x24   :  { %s597_s14 = scalar_lea.hbm %s838_s2, 384 }
  0x25   :  { %p598_p2 = scmp.ne.s32.totalorder %s838_s2, %s597_s14  ;;  %p601_p3 = scmp.lt.u32.totalorder %s597_s14, %s838_s2 }
  0x27   :  { %p603_p4 = pnand %p601_p3, %p598_p2 }
  0x29   :  { %606 = shalt.err (!%p603_p4)
}
  0x2a   :  { %s607_s19 = scalar_lea.vmem %s39_s29, 384  ;;  %p612_p6 = scmp.lt.s32.totalorder %s39_s29, %s39_s29 }
  0x2b   :  { %p608_p5 = scmp.ne.s32.totalorder %s39_s29, %s607_s19  ;;  %p613_p7 = scmp.lt.s32.totalorder %s607_s19, %s607_s19 }
  0x2d   :  { %p614_p8 = por %p613_p7, %p612_p6 }
  0x2f   :  { %p615_p9 = pnand %p614_p8, %p608_p5 }
  0x31   :  { %618 = shalt.err (!%p615_p9)
}
  0x32   :  { %44 = dma.hbm_to_vmem [thread:$0]  %s838_s2, 384, %s39_s29, [#allocation7], %s648_s22, %s648_s22, %s649_s23  }
  0x33   :  { %641 = dma.done.wait [#allocation4], 32  }
  0x34   :  { %642 = vsyncadd [#allocation4], 4294967264 }
  0x35   :  { %643 = dma.done.wait [#allocation7], 1152  }
  0x36   :  { %644 = vsyncadd [#allocation7], 4294966144  ;;  %v652_v0 = vmov 2   ;;  %v653_v1 = vmov 0   ;;  %v742_v2 = vld [vmem:[#allocation3] sm:$0x3]  ;;  %v61_v41 = vlaneseq }
  0x37   :  { %529 = vset.pattern.permute.xlu1 %v652_v0  ;;  %527 = vset.pattern.permute.xlu0 %v653_v1  ;;  %v654_v3 = vmov 0.0   ;;  %v655_v4 = vmov 3   ;;  %v656_v5 = vmov 1   ;;  %v657_v6 = vmov 4   ;;  %v234_v24 = vld [vmem:[#allocation6] sm:$0xff]  ;;  %v235_v25 = vld [vmem:[#allocation6 + $0x8] sm:$0xff] }
  0x38   :  { %58 = vst [vmem:[#allocation2] sm:$0x3] %v654_v3  ;;  %80 = vperm.xlu1 %529, %v742_v2   ;;  %66 = vperm.xlu0 %527, %v742_v2   ;;  %v658_v7 = vmov 5   ;;  %v659_v8 = vmov 6   ;;  %v660_v9 = vmov 8   ;;  %v661_v10 = vmov 7  }
  0x39   :  { %v662_v11 = vmov 11   ;;  %v663_v12 = vmov 9   ;;  %v664_v13 = vmov 14   ;;  %v665_v14 = vmov 10   ;;  %v322_v29 = vld [vmem:[#allocation8] sm:$0xff]  ;;  %v323_v30 = vld [vmem:[#allocation8 + $0x8] sm:$0xff] }
  0x3a   :  { %v666_v15 = vmov 17   ;;  %v667_v16 = vmov 12   ;;  %v668_v17 = vmov 20   ;;  %v669_v18 = vmov 13   ;;  %v236_v32 = vld [vmem:[#allocation6 + $0x10] sm:$0xff]  ;;  %v237_v33 = vld [vmem:[#allocation6 + $0x18] sm:$0xff] }
  0x3b   :  { %v670_v19 = vmov 23   ;;  %v671_v20 = vmov 15   ;;  %v672_v21 = vmov 16   ;;  %v673_v22 = vmov 18   ;;  %v324_v36 = vld [vmem:[#allocation8 + $0x10] sm:$0xff]  ;;  %v239_v38 = vld [vmem:[#allocation6 + $0x28] sm:$0xff] }
  0x3c   :  { %530 = vset.pattern.permute.xlu1 %v655_v4  ;;  %528 = vset.pattern.permute.xlu0 %v656_v5  ;;  %v674_v23 = vmov 19   ;;  %v483_v26 = vpack.c.bf16 %v235_v25, %v234_v24  ;;  %v675_v27 = vmov 21   ;;  %v676_v28 = vmov 0.0|0.0   ;;  %v238_v37 = vld [vmem:[#allocation6 + $0x20] sm:$0xff]  ;;  %s679_s2 = smov [#allocation9]  }
  0x3d   :  { %87 = vperm.xlu1 %530, %v742_v2   ;;  %73 = vperm.xlu0 %528, %v742_v2   ;;  %v492_v31 = vpack.c.bf16 %v323_v30, %v322_v29  ;;  %v486_v34 = vpack.c.bf16 %v237_v33, %v236_v32  ;;  %v677_v35 = vmov 22   ;;  %vm319_vm0 = vcmp.ge.s32.totalorder %v742_v2, 0  ;;  %s410_s21 = sshll.u32 %s679_s2, 4  ;;  %s411_s21 = int_to_ptr.vmem [resolvable:$true] %s410_s21 }
  0x3e   :  { %482 = vmatprep.subr.bf16.mxu0 %v676_v28  ;;  %491 = vmatprep.subr.bf16.mxu1 %v676_v28  ;;  %vm678_vm1 = vmmov 0   ;;  %v445_v39 = vsel %vm319_vm0, 1.0, %v654_v3  ;;  %vm325_vm2 = vcmask 195584   ;;  %v489_v40 = vpack.c.bf16 %v239_v38, %v238_v37  ;;  %s619_s22 = scalar_lea.vmem %s411_s21, 32  ;;  %p624_p11 = scmp.lt.s32.totalorder %s411_s21, %s411_s21 }
  0x3f   :  { %484 = vmatpush3.bf16.msra.mxu0 %v483_v26  ;;  %493 = vmatpush3.bf16.msra.mxu1 %v492_v31  ;;  %v774_v42 = vand.u32 127, %v61_v41  ;;  %p620_p10 = scmp.ne.s32.totalorder %s411_s21, %s619_s22  ;;  %p625_p12 = scmp.lt.s32.totalorder %s619_s22, %s619_s22 }
  0x40   :  { %485 = vmatprep.subr.bf16.mxu0 %v676_v28  ;;  %477 = vmatprep.subr.mxu1 %v654_v3 }
  0x41   :  { %531 = vset.pattern.permute.xlu1 %v657_v6  ;;  %532 = vset.pattern.permute.xlu0 %v658_v7  ;;  %p626_p13 = por %p625_p12, %p624_p11 }
  0x42   :  { %94 = vperm.xlu1 %531, %v742_v2   ;;  %101 = vperm.xlu0 %532, %v742_v2  }
  0x43   :  { %487 = vmatpush3.bf16.msra.mxu0 %v486_v34  ;;  %478 = vmatpush3.msra.mxu1 %v324_v36  ;;  %p627_p0 = pnand %p626_p13, %p620_p10 }
  0x44   :  { %488 = vmatprep.subr.bf16.mxu0 %v676_v28  ;;  %479 = vmatprep.mubr.msk.f32.mxu1 %vm678_vm1, %v654_v3 }
  0x45   :  { %480 = vmatmul.mubr.msk.f32.vlgmr.msra.gmra.mrb[0].mxu1 %vm325_vm2, %v445_v39  ;;  %470 = vmatprep.mubr.msk.f32.mxu0 %vm678_vm1, %v654_v3 }
  0x46   :  { %533 = vset.pattern.permute.xlu1 %v659_v8  ;;  %535 = vset.pattern.permute.xlu0 %v660_v9 }
  0x47   :  { %108 = vperm.xlu1 %533, %v742_v2   ;;  %122 = vperm.xlu0 %535, %v742_v2  }
  0x48   :  { %490 = vmatpush3.bf16.msra.mxu0 %v489_v40 }
  0x4b   :  { %534 = vset.pattern.permute.xlu1 %v661_v10  ;;  %538 = vset.pattern.permute.xlu0 %v662_v11 }
  0x4c   :  { %115 = vperm.xlu1 %534, %v742_v2   ;;  %143 = vperm.xlu0 %538, %v742_v2  }
  0x50   :  { %536 = vset.pattern.permute.xlu1 %v663_v12  ;;  %541 = vset.pattern.permute.xlu0 %v664_v13 }
  0x51   :  { %129 = vperm.xlu1 %536, %v742_v2   ;;  %164 = vperm.xlu0 %541, %v742_v2  }
  0x55   :  { %537 = vset.pattern.permute.xlu1 %v665_v14  ;;  %544 = vset.pattern.permute.xlu0 %v666_v15 }
  0x56   :  { %136 = vperm.xlu1 %537, %v742_v2   ;;  %185 = vperm.xlu0 %544, %v742_v2  }
  0x5a   :  { %539 = vset.pattern.permute.xlu1 %v667_v16  ;;  %547 = vset.pattern.permute.xlu0 %v668_v17 }
  0x5b   :  { %150 = vperm.xlu1 %539, %v742_v2   ;;  %206 = vperm.xlu0 %547, %v742_v2  }
  0x5f   :  { %540 = vset.pattern.permute.xlu1 %v669_v18  ;;  %550 = vset.pattern.permute.xlu0 %v670_v19 }
  0x60   :  { %157 = vperm.xlu1 %540, %v742_v2   ;;  %227 = vperm.xlu0 %550, %v742_v2  }
  0x64   :  { %542 = vset.pattern.permute.xlu1 %v671_v20 }
  0x65   :  { %171 = vperm.xlu1 %542, %v742_v2  }
  0x69   :  { %543 = vset.pattern.permute.xlu1 %v672_v21 }
  0x6a   :  { %178 = vperm.xlu1 %543, %v742_v2  }
  0x6e   :  { %545 = vset.pattern.permute.xlu1 %v673_v22 }
  0x6f   :  { %192 = vperm.xlu1 %545, %v742_v2  }
  0x73   :  { %546 = vset.pattern.permute.xlu1 %v674_v23 }
  0x74   :  { %199 = vperm.xlu1 %546, %v742_v2  }
  0x78   :  { %548 = vset.pattern.permute.xlu1 %v675_v27 }
  0x79   :  { %213 = vperm.xlu1 %548, %v742_v2  }
  0x7d   :  { %549 = vset.pattern.permute.xlu1 %v677_v35 }
  0x7e   :  { %220 = vperm.xlu1 %549, %v742_v2  }
  0xb7   :  { %v81_v43 = vpop.permute.xlu1 %80  ;;  %v67_v44 = vpop.permute.xlu0 %66 }
  0xb8   :  { %vm68_vm3 = vcmp.eq.s32.totalorder %v67_v44, %v774_v42  ;;  %vm82_vm4 = vcmp.eq.s32.totalorder %v81_v43, %v774_v42 }
  0xb9   :  { %v420_v45 = vsel %vm68_vm3, 1.0, %v654_v3  ;;  %v422_v50 = vsel %vm82_vm4, 1.0, %v654_v3 }
  0xbc   :  { %v88_v46 = vpop.permute.xlu1 %87  ;;  %v74_v47 = vpop.permute.xlu0 %73 }
  0xbd   :  { %vm75_vm5 = vcmp.eq.s32.totalorder %v74_v47, %v774_v42  ;;  %vm89_vm6 = vcmp.eq.s32.totalorder %v88_v46, %v774_v42 }
  0xbe   :  { %v421_v48 = vsel %vm75_vm5, 1.0, %v654_v3  ;;  %v423_v54 = vsel %vm89_vm6, 1.0, %v654_v3 }
  0xbf   :  { %v78_v49 = vadd.f32 %v421_v48, %v420_v45 }
  0xc1   :  { %v85_v51 = vadd.f32 %v422_v50, %v78_v49  ;;  %v95_v52 = vpop.permute.xlu1 %94  ;;  %v102_v53 = vpop.permute.xlu0 %101 }
  0xc2   :  { %vm96_vm7 = vcmp.eq.s32.totalorder %v95_v52, %v774_v42  ;;  %vm103_vm8 = vcmp.eq.s32.totalorder %v102_v53, %v774_v42 }
  0xc3   :  { %v92_v55 = vadd.f32 %v423_v54, %v85_v51  ;;  %v424_v56 = vsel %vm96_vm7, 1.0, %v654_v3  ;;  %v425_v58 = vsel %vm103_vm8, 1.0, %v654_v3 }
  0xc5   :  { %v99_v57 = vadd.f32 %v424_v56, %v92_v55  ;;  %v233_v55 = vld [vmem:[#allocation2] sm:$0x3] }
  0xc6   :  { %v109_v59 = vpop.permute.xlu1 %108  ;;  %v123_v62 = vpop.permute.xlu0 %122 }
  0xc7   :  { %vm110_vm9 = vcmp.eq.s32.totalorder %v109_v59, %v774_v42  ;;  %v106_v60 = vadd.f32 %v425_v58, %v99_v57  ;;  %vm124_vm11 = vcmp.eq.s32.totalorder %v123_v62, %v774_v42 }
  0xc8   :  { %v426_v61 = vsel %vm110_vm9, 1.0, %v654_v3  ;;  %v428_v4 = vsel %vm124_vm11, 1.0, %v654_v3  ;;  %vm240_vm11 = vcmask 392192  }
  0xc9   :  { %v113_v0 = vadd.f32 %v426_v61, %v106_v60 }
  0xcb   :  { %v116_v63 = vpop.permute.xlu1 %115  ;;  %v144_v8 = vpop.permute.xlu0 %143 }
  0xcc   :  { %vm117_vm10 = vcmp.eq.s32.totalorder %v116_v63, %v774_v42  ;;  %vm145_vm14 = vcmp.eq.s32.totalorder %v144_v8, %v774_v42 }
  0xcd   :  { %v427_v1 = vsel %vm117_vm10, 1.0, %v654_v3  ;;  %v431_v13 = vsel %vm145_vm14, 1.0, %v654_v3 }
  0xce   :  { %v120_v2 = vadd.f32 %v427_v1, %v113_v0 }
  0xd0   :  { %v130_v5 = vpop.permute.xlu1 %129  ;;  %v127_v6 = vadd.f32 %v428_v4, %v120_v2  ;;  %v165_v17 = vpop.permute.xlu0 %164 }
  0xd1   :  { %vm131_vm12 = vcmp.eq.s32.totalorder %v130_v5, %v774_v42  ;;  %vm166_vm1 = vcmp.eq.s32.totalorder %v165_v17, %v774_v42 }
  0xd2   :  { %v429_v7 = vsel %vm131_vm12, 1.0, %v654_v3  ;;  %v434_v22 = vsel %vm166_vm1, 1.0, %v654_v3 }
  0xd3   :  { %v134_v10 = vadd.f32 %v429_v7, %v127_v6 }
  0xd5   :  { %v137_v9 = vpop.permute.xlu1 %136  ;;  %v186_v26 = vpop.permute.xlu0 %185 }
  0xd6   :  { %vm138_vm13 = vcmp.eq.s32.totalorder %v137_v9, %v774_v42  ;;  %vm187_vm4 = vcmp.eq.s32.totalorder %v186_v26, %v774_v42 }
  0xd7   :  { %v430_v11 = vsel %vm138_vm13, 1.0, %v654_v3  ;;  %v437_v31 = vsel %vm187_vm4, 1.0, %v654_v3 }
  0xd8   :  { %v141_v12 = vadd.f32 %v430_v11, %v134_v10 }
  0xda   :  { %v151_v14 = vpop.permute.xlu1 %150  ;;  %v148_v15 = vadd.f32 %v431_v13, %v141_v12  ;;  %v207_v35 = vpop.permute.xlu0 %206 }
  0xdb   :  { %vm152_vm15 = vcmp.eq.s32.totalorder %v151_v14, %v774_v42  ;;  %vm208_vm7 = vcmp.eq.s32.totalorder %v207_v35, %v774_v42 }
  0xdc   :  { %v432_v16 = vsel %vm152_vm15, 1.0, %v654_v3  ;;  %v440_v40 = vsel %vm208_vm7, 1.0, %v654_v3 }
  0xdd   :  { %v155_v19 = vadd.f32 %v432_v16, %v148_v15 }
  0xdf   :  { %v158_v18 = vpop.permute.xlu1 %157  ;;  %v228_v43 = vpop.permute.xlu0 %227 }
  0xe0   :  { %vm159_vm0 = vcmp.eq.s32.totalorder %v158_v18, %v774_v42  ;;  %vm229_vm9 = vcmp.eq.s32.totalorder %v228_v43, %v774_v42 }
  0xe1   :  { %v433_v20 = vsel %vm159_vm0, 1.0, %v654_v3  ;;  %v443_v49 = vsel %vm229_vm9, 1.0, %v654_v3 }
  0xe2   :  { %v162_v21 = vadd.f32 %v433_v20, %v155_v19 }
  0xe4   :  { %v172_v23 = vpop.permute.xlu1 %171  ;;  %v169_v24 = vadd.f32 %v434_v22, %v162_v21 }
  0xe5   :  { %vm173_vm2 = vcmp.eq.s32.totalorder %v172_v23, %v774_v42 }
  0xe6   :  { %v435_v25 = vsel %vm173_vm2, 1.0, %v654_v3 }
  0xe7   :  { %v176_v28 = vadd.f32 %v435_v25, %v169_v24 }
  0xe9   :  { %v179_v27 = vpop.permute.xlu1 %178 }
  0xea   :  { %vm180_vm3 = vcmp.eq.s32.totalorder %v179_v27, %v774_v42 }
  0xeb   :  { %v436_v29 = vsel %vm180_vm3, 1.0, %v654_v3 }
  0xec   :  { %v183_v30 = vadd.f32 %v436_v29, %v176_v28 }
  0xee   :  { %v193_v32 = vpop.permute.xlu1 %192  ;;  %v190_v33 = vadd.f32 %v437_v31, %v183_v30 }
  0xef   :  { %vm194_vm5 = vcmp.eq.s32.totalorder %v193_v32, %v774_v42 }
  0xf0   :  { %v438_v34 = vsel %vm194_vm5, 1.0, %v654_v3 }
  0xf1   :  { %v197_v37 = vadd.f32 %v438_v34, %v190_v33 }
  0xf3   :  { %v200_v36 = vpop.permute.xlu1 %199 }
  0xf4   :  { %vm201_vm6 = vcmp.eq.s32.totalorder %v200_v36, %v774_v42 }
  0xf5   :  { %v439_v38 = vsel %vm201_vm6, 1.0, %v654_v3 }
  0xf6   :  { %v204_v39 = vadd.f32 %v439_v38, %v197_v37 }
  0xf8   :  { %v214_v41 = vpop.permute.xlu1 %213  ;;  %v211_v44 = vadd.f32 %v440_v40, %v204_v39 }
  0xf9   :  { %vm215_vm8 = vcmp.eq.s32.totalorder %v214_v41, %v774_v42 }
  0xfa   :  { %v441_v45 = vsel %vm215_vm8, 1.0, %v654_v3 }
  0xfb   :  { %v218_v47 = vadd.f32 %v441_v45, %v211_v44 }
  0xfd   :  { %v221_v46 = vpop.permute.xlu1 %220 }
  0xfe   :  { %vm222_vm10 = vcmp.eq.s32.totalorder %v221_v46, %v774_v42 }
  0xff   :  { %v442_v48 = vsel %vm222_vm10, 1.0, %v654_v3 }
 0x100   :  { %v225_v50 = vadd.f32 %v442_v48, %v218_v47 }
 0x102   :  { %v232_v51 = vadd.f32 %v443_v49, %v225_v50 }
 0x104   :  { %471 = vmatmul.mubr.msk.f32.vlgmr.msra.gmra.mrb[0].mxu0 %vm240_vm11, %v232_v51 }
 0x118   :  { %v395_v52 = vpop.f32.mrb[0].mxu1 }
 0x119   :  { %v481_v53 = vpop.f32.mrb[1].mxu1  ;;  %v400_v54 = vmax.f32 %v395_v52, 1.0 }
 0x11b   :  { %551 = vrcp.f32 %v400_v54 }
 0x125   :  { %v552_v59 = vpop.eup %551 }
 0x1d7   :  { %v310_v56 = vpop.f32.mrb[0].mxu0 }
 0x1d8   :  { %v314_v57 = vadd.f32 %v310_v56, %v233_v55  ;;  %v472_v58 = vpop.f32.mrb[1].mxu0 }
 0x1da   :  { %315 = vst [vmem:[#allocation2] sm:$0x3] %v314_v57 }
 0x1e1   :  { %v399_v42 = vld [vmem:[#allocation2] sm:$0x3] }
 0x1e2   :  { %v402_v60 = vmul.f32 %v552_v59, %v399_v42 }
 0x1e4   :  { %403 = vst [vmem:[#allocation9] sm:$0x3] %v402_v60 }
 0x1e5   :  { %630 = shalt.err (!%p627_p0)
}
 0x1e6   :  { %s631_s25 = scalar_lea.hbm %s839_s3, 32 }
 0x1e7   :  { %p632_p1 = scmp.ne.s32.totalorder %s839_s3, %s631_s25  ;;  %p635_p2 = scmp.lt.u32.totalorder %s631_s25, %s839_s3 }
 0x1e9   :  { %p637_p3 = pnand %p635_p2, %p632_p1 }
 0x1eb   :  { %640 = shalt.err (!%p637_p3)
}
 0x1ec   :  { %413 = dma.vmem_to_hbm [thread:$0]  %s411_s21, 32, %s839_s3, [#allocation5]  }
 0x1ed   :  { %645 = dma.done.wait [#allocation5], 32  }
 0x1ee   :  { %646 = vsyncadd [#allocation5], 4294967264 }
 0x1ef   :  { %417 = vsyncpa [#allocation4], 1 }
 0x1f0   :  { %418 = vsyncpa [#allocation7], 1 }
 0x1f1   :  { %419 = vsyncpa [#allocation5], 1 }

</bundles_post_ra>
